<compile_context>
chip_gen: v7x
topology: tpu7x:2x2x1
jax: 0.10.0
libtpu: 0.0.40
codegen_flags: <defaults>
</compile_context>

<pallas_src>
import jax
import jax.numpy as jnp
from jax.experimental import pallas as pl
from jax.experimental.pallas import tpu as pltpu


def _round_up(x, m):
    return (x + m - 1) // m * m


# ~4 MiB input blocks: large enough that the ~0.35us/step pipeline overhead is <10% of per-step
# DMA time even at v7x's ~3.2 TB/s HBM, small enough that in+out double-buffering plus in-kernel
# f32 temporaries stays well inside v7x's 64 MiB/TC VMEM (v5e/v6e have 128 MiB).
_TARGET_BLOCK_BYTES = 4 << 20
_VMEM_FLOOR = 32 << 20
_VMEM_CEIL = 56 << 20   # block sizing keeps `need` below this, so the cap never under-budgets


def _vmem_limit(block_elems, itemsize):
    io_bytes = block_elems * itemsize
    f32_bytes = block_elems * 4
    # 2 refs (in + out) * double-buffer + ~3 live f32 temporaries inside the kernel
    # (x_f32, centered copy, product) + weight + slack.
    need = 4 * io_bytes + 3 * f32_bytes + (1 << 20)
    return int(min(max(need, _VMEM_FLOOR), _VMEM_CEIL))


def _choose_tile(total, unit_bytes, align, min_steps=4):
    """Tile size (multiple of `align`) along the blocked axis.

    Sized to ~_TARGET_BLOCK_BYTES, but capped so the grid has >= `min_steps` steps when the
    tensor is big enough -- v7x has 2 TensorCores that only get work if the 'parallel' grid
    axis has more than one step per core.
    """
    tile = max(align, (_TARGET_BLOCK_BYTES // unit_bytes) // align * align)
    tile = min(tile, _round_up(total, align))
    if total > min_steps * align:
        tile = min(tile, max(align, (total // min_steps) // align * align))
    return tile


def _cost_estimate(n_elems, n_rows, itemsize):
    # Strictly HBM-bound: read x once, write out once.  ~7 flops/elem
    # (mean, centered square, two sums, scale, weight), one rsqrt per normalized row.
    return pl.CostEstimate(
        flops=7 * n_elems,
        transcendentals=n_rows,
        bytes_accessed=2 * n_elems * itemsize,
    )


# ---------------------------------------------------------------------------
# Kernel bodies (two-pass biased variance: var = mean((x - mean(x))^2))
# ---------------------------------------------------------------------------

def _ln_rows_kernel(x_ref, w_ref, o_ref):
    # x_ref: (TILE_ROWS, C) channels-last rows; w_ref: (1, C).
    x = x_ref[...].astype(jnp.float32)
    w = w_ref[...].astype(jnp.float32)
    inv_c = jnp.float32(1.0 / x.shape[-1])
    mu = jnp.sum(x, axis=-1, keepdims=True) * inv_c
    xc = x - mu
    var = jnp.sum(xc * xc, axis=-1, keepdims=True) * inv_c      # unbiased=False, >= 0
    inv = jax.lax.rsqrt(var + jnp.float32(1e-5))
    o_ref[...] = (x * inv * w).astype(o_ref.dtype)               # x (not xc): bias-free LN


def _ln_nchw_kernel(x_ref, w_ref, o_ref):
    # x_ref: (1, C, TILE_HW); reduce over C (sublane axis); H*W is the lane-dense axis.
    x = x_ref[...].astype(jnp.float32)
    w = w_ref[...].astype(jnp.float32)                           # (1, C, 1)
    inv_c = jnp.float32(1.0 / x.shape[1])
    mu = jnp.sum(x, axis=1, keepdims=True) * inv_c
    xc = x - mu
    var = jnp.sum(xc * xc, axis=1, keepdims=True) * inv_c
    inv = jax.lax.rsqrt(var + jnp.float32(1e-5))
    o_ref[...] = (x * inv * w).astype(o_ref.dtype)


# ---------------------------------------------------------------------------
# Wrappers
# ---------------------------------------------------------------------------

def biasfree_layernorm(x, weight):
    """Literal BiasFree_LayerNorm.forward: normalize the last dim of x (any leading dims).

    NOTE: when the normalized dim C is small (< 128), the channels-last output layout forces
    masked partial stores (only C of 128 lanes used).  For the MUSE NCHW usage pattern prefer
    biasfree_layernorm_nchw, which keeps H*W lane-dense and reduces over C on the sublane axis.
    """
    orig_shape = x.shape
    C = orig_shape[-1]
    R = 1
    for d in orig_shape[:-1]:
        R *= d
    x2d = x.reshape(R, C)

    itemsize = jnp.dtype(x.dtype).itemsize
    # TODO(synk): for extremely large C (8 * C * itemsize >> VMEM budget) split C across an extra
    # 'arbitrary' grid axis with s1/s2 accumulators and a finalize step instead of one big block.
    tile_rows = _choose_tile(R, C * itemsize, align=8)
    n_blocks = pl.cdiv(R, tile_rows)
    w2d = weight.reshape(1, C)

    # Ragged R: the last block extends past R.  Pallas masks the output writeback to the array
    # bounds; stale data in the OOB rows of the input buffer is harmless because every row is
    # normalized independently (no cross-row reduction -- keep it that way if extending this).
    out = pl.pallas_call(
        _ln_rows_kernel,
        out_shape=jax.ShapeDtypeStruct((R, C), x.dtype),
        grid_spec=pltpu.PrefetchScalarGridSpec(
            num_scalar_prefetch=0,
            grid=(n_blocks,),
            in_specs=[
                pl.BlockSpec((tile_rows, C), lambda i: (i, 0)),
                pl.BlockSpec((1, C), lambda i: (0, 0)),
            ],
            out_specs=pl.BlockSpec((tile_rows, C), lambda i: (i, 0)),
        ),
        compiler_params=pltpu.CompilerParams(
            dimension_semantics=("parallel",),
            vmem_limit_bytes=_vmem_limit(tile_rows * C, itemsize),
        ),
        cost_estimate=_cost_estimate(R * C, R, itemsize),
    )(x2d, w2d)

    return out.reshape(orig_shape)


def biasfree_layernorm_nchw(x_nchw, weight):
    """BiasFree_LayerNorm over the channel dim of an NCHW tensor, fused in-layout.

    Equivalent to rearrange('b c h w -> b (h w) c') -> LN(C) -> rearrange back, without the
    HBM transposes and with lane-dense (H*W) loads/stores even for small C.
    """
    B, C, H, W = x_nchw.shape
    HW = H * W
    x3d = x_nchw.reshape(B, C, HW)          # contiguous view, no data movement

    itemsize = jnp.dtype(x_nchw.dtype).itemsize
    tile_hw = _choose_tile(HW, C * itemsize, align=128)
    n_blocks = pl.cdiv(HW, tile_hw)
    w3d = weight.reshape(1, C, 1)

    # Ragged HW: partial last block handled by Pallas masking; stale OOB lanes are harmless
    # because each spatial position is normalized independently (reduction is only over C).
    out = pl.pallas_call(
        _ln_nchw_kernel,
        out_shape=jax.ShapeDtypeStruct((B, C, HW), x_nchw.dtype),
        grid_spec=pltpu.PrefetchScalarGridSpec(
            num_scalar_prefetch=0,
            grid=(B, n_blocks),
            in_specs=[
                pl.BlockSpec((1, C, tile_hw), lambda b, t: (b, 0, t)),
                pl.BlockSpec((1, C, 1), lambda b, t: (0, 0, 0)),
            ],
            out_specs=pl.BlockSpec((1, C, tile_hw), lambda b, t: (b, 0, t)),
        ),
        compiler_params=pltpu.CompilerParams(
            dimension_semantics=("parallel", "parallel"),
            vmem_limit_bytes=_vmem_limit(C * tile_hw, itemsize),
        ),
        cost_estimate=_cost_estimate(B * C * HW, B * HW, itemsize),
    )(x3d, w3d)

    return out.reshape(B, C, H, W)


if __name__ == "__main__":
    key = jax.random.PRNGKey(0)
    k1, k2, k3 = jax.random.split(key, 3)

    # --- literal module forward: (b, seq, c), normalize last dim; ragged rows exercise the
    #     masked partial last block (2*255 = 510 rows, tile of 120 -> 5 blocks, last partial).
    B, L, C = 2, 255, 32
    x_seq = jax.random.normal(k1, (B, L, C), dtype=jnp.float32)
    weight = 1.0 + 0.1 * jax.random.normal(k3, (C,), dtype=jnp.float32)

    out_seq = jax.block_until_ready(biasfree_layernorm(x_seq, weight))
    var = jnp.var(x_seq, axis=-1, keepdims=True)
    ref_seq = x_seq / jnp.sqrt(var + 1e-5) * weight
    assert out_seq.shape == x_seq.shape
    assert jnp.max(jnp.abs(out_seq - ref_seq)) < 2e-4

    # --- fused NCHW path (as used in MUSE_net: rearrange -> LN(C) -> rearrange back)
    Bn, Cn, H, W = 2, 32, 16, 16
    x_img = jax.random.normal(k2, (Bn, Cn, H, W), dtype=jnp.float32)
    w_img = 1.0 + 0.1 * jax.random.normal(k3, (Cn,), dtype=jnp.float32)

    out_img = jax.block_until_ready(biasfree_layernorm_nchw(x_img, w_img))
    var_c = jnp.var(x_img, axis=1, keepdims=True)
    ref_img = x_img / jnp.sqrt(var_c + 1e-5) * w_img.reshape(1, Cn, 1, 1)
    assert out_img.shape == x_img.shape
    assert jnp.max(jnp.abs(out_img - ref_img)) < 2e-4

    print("KERNEL_OK")
</pallas_src>

<mosaic_0001>
module attributes {stable_mosaic.version = 11 : i64} {
  func.func @_ln_rows_kernel(%arg0: i32, %arg1: memref<120x32xf32, #tpu.memory_space<vmem>>, %arg2: memref<1x32xf32, #tpu.memory_space<vmem>>, %arg3: memref<120x32xf32, #tpu.memory_space<vmem>>) attributes {dimension_semantics = [#tpu.dimension_semantics<parallel>], iteration_bounds = array<i64: 5>, scalar_prefetch = 0 : i64, scratch_operands = 0 : i64, tpu.core_type = #tpu.core_type<tc>, window_params = [{transform_indices = @transform_0, window_bounds = array<i64: 120, 32>}, {pipeline_mode = #tpu.pipeline_mode<synchronous>, transform_indices = @transform_1, window_bounds = array<i64: 1, 32>}, {transform_indices = @transform_2, window_bounds = array<i64: 120, 32>}]} {
    %c0 = arith.constant 0 : index
    %c0_0 = arith.constant 0 : index
    %0 = vector.load %arg1[%c0, %c0_0] : memref<120x32xf32, #tpu.memory_space<vmem>>, vector<120x32xf32>
    %c0_1 = arith.constant 0 : index
    %c0_2 = arith.constant 0 : index
    %1 = vector.load %arg2[%c0_1, %c0_2] : memref<1x32xf32, #tpu.memory_space<vmem>>, vector<1x32xf32>
    %cst = arith.constant dense<0.000000e+00> : vector<120xf32>
    %2 = vector.multi_reduction <add>, %0, %cst [1] : vector<120x32xf32> to vector<120xf32>
    %3 = vector.shape_cast %2 : vector<120xf32> to vector<120x1xf32>
    %cst_3 = arith.constant 3.125000e-02 : f32
    %4 = vector.broadcast %cst_3 : f32 to vector<120x1xf32>
    %5 = arith.mulf %3, %4 : vector<120x1xf32>
    %6 = vector.broadcast %5 : vector<120x1xf32> to vector<120x32xf32>
    %7 = arith.subf %0, %6 : vector<120x32xf32>
    %8 = arith.mulf %7, %7 : vector<120x32xf32>
    %cst_4 = arith.constant dense<0.000000e+00> : vector<120xf32>
    %9 = vector.multi_reduction <add>, %8, %cst_4 [1] : vector<120x32xf32> to vector<120xf32>
    %10 = vector.shape_cast %9 : vector<120xf32> to vector<120x1xf32>
    %cst_5 = arith.constant 3.125000e-02 : f32
    %11 = vector.broadcast %cst_5 : f32 to vector<120x1xf32>
    %12 = arith.mulf %10, %11 : vector<120x1xf32>
    %cst_6 = arith.constant 9.99999974E-6 : f32
    %13 = vector.broadcast %cst_6 : f32 to vector<120x1xf32>
    %14 = arith.addf %12, %13 : vector<120x1xf32>
    %15 = math.rsqrt %14 : vector<120x1xf32>
    %16 = vector.broadcast %15 : vector<120x1xf32> to vector<120x32xf32>
    %17 = arith.mulf %0, %16 : vector<120x32xf32>
    %18 = vector.broadcast %1 : vector<1x32xf32> to vector<120x32xf32>
    %19 = arith.mulf %17, %18 : vector<120x32xf32>
    %c0_7 = arith.constant 0 : index
    %c0_8 = arith.constant 0 : index
    %20 = vector.load %arg3[%c0_7, %c0_8] : memref<120x32xf32, #tpu.memory_space<vmem>>, vector<120x32xf32>
    tpu.vector_store %arg3[%c0_7, %c0_8], %19 {strides = array<i32>} : memref<120x32xf32, #tpu.memory_space<vmem>>, vector<120x32xf32>,
    return
  }
  func.func @transform_0(%arg0: i32) -> (i32, i32) {
    %c0_i32 = arith.constant 0 : i32
    %c0_i32_0 = arith.constant 0 : i32
    return %arg0, %c0_i32 : i32, i32
  }
  func.func @transform_1(%arg0: i32) -> (i32, i32) {
    %c0_i32 = arith.constant 0 : i32
    %c0_i32_0 = arith.constant 0 : i32
    %c0_i32_1 = arith.constant 0 : i32
    return %c0_i32, %c0_i32_0 : i32, i32
  }
  func.func @transform_2(%arg0: i32) -> (i32, i32) {
    %c0_i32 = arith.constant 0 : i32
    %c0_i32_0 = arith.constant 0 : i32
    return %arg0, %c0_i32 : i32, i32
  }
}

</mosaic_0001>

<bundles_post_ra>
// kernel: tpu_custom_call.1
= control target key start
LH: loop header
LB: loop body
LE: loop exit
PB: predicated region body
PF: predicated region fallthrough
CT: control target
= control target key end

     0   :  { %s932_s9 = smov 0   ;;  %s934_s10 = smov 0   ;;  %s1237_s0 = inlined_call_operand.vmem [shape: f32[510,32], index: 0, kind: input, shape index: {}]   ;;  %s1238_s1 = inlined_call_operand.vmem [shape: f32[1,32], index: 1, kind: input, shape index: {}]   ;;  %s1239_s2 = inlined_call_operand.vmem [shape: f32[510,32], index: 2, kind: output, shape index: {}]  }
   0x1   :  { %s936_s11 = smov 0  }
   0x2 LB: > { %s945_s12 = sadd.s32 4294967295, %s883_s11   ;;  %s947_s13 = sadd.s32 1, %s883_s11   ;;  %s883_s11 = sphi %s936_s11, %s1246_s11   ;;  %s879_s10 = sphi %s934_s10, %s1245_s10   ;;  %s875_s9 = sphi %s932_s9, %s1244_s9  }
   0x3   : > { %s63_s14 = ssub.s32 %s883_s11, %s947_s13  ;;  %s66_s15 = sadd.s32 1, %s879_s10 }
   0x4   : > { %p64_p0 = scmp.eq.s32.totalorder %s63_s14, 0  ;;  %p76_p1 = scmp.ne.s32.totalorder %s879_s10, %s875_s9 }
   0x5   : > { %p77_p2 = scmp.eq.s32.totalorder %s945_s12, 4  ;;  %p689_p3 = scmp.ge.s32.totalorder %s883_s11, 1 }
   0x6   : > { %s955_s16 = scalar_select %p64_p0, %s879_s10, %s66_s15  }
   0x7   : > { %p957_p4 = por %p77_p2, %p76_p1  ;;  %p121_p5 = scmp.lt.s32.totalorder %s883_s11, 6 }
   0x9   : > { %p122_p6 = pnand %p689_p3, %p121_p5 }
   0xa   : > { %s962_s18 = smul.u32 (!%p122_p6), 15, %s945_s12  ;;  %vm181_vm0 = vcmask (!%p122_p6), 261120   ;;  %s143_s24 = sand.u32 (!%p122_p6), 1, %s875_s9  }
   0xb   : > { %125 = sbr.rel (%p122_p6) target bundleno = 425 (0x1a9), region = 28 }
   0xc   : > { %p151_p7 = scmp.lt.s32.totalorder (!%p122_p6), %s962_s18, 63  ;;  %s705_s25 = smul.u32 (!%p122_p6), 120, %s143_s24 }
   0xe   : > { %s1084_s28 = scalar_lea.vmem (!%p122_p6), [#allocation2], %s705_s25  }
  0x12   : > { %s152_s19 = scalar_select %p151_p7, %s962_s18, 63 }
  0x13   : > { %s421_s29 = ssub.s32 (%p957_p4), 64, %s962_s18  ;;  %s704_s30 = smul.u32 (%p957_p4), 120, %s945_s12 }
  0x14   : > { %s690_s20 = sshll.u32 %s152_s19, 3  ;;  %p422_p8 = scmp.lt.s32.totalorder (%p957_p4), %s421_s29, 15 }
  0x15   : > { %s969_s23 = scalar_lea.vmem %s1237_s0, %s690_s20  ;;  %s1151_s5 = scalar_lea.vmem (%p957_p4), %s1239_s2, %s704_s30  }
  0x16   : > { %v972_v0 = vld [vmem:[%s969_s23] sm:$0xff]  ;;  %v975_v1 = vld [vmem:[%s969_s23 + $0x10] sm:$0xff]  ;;  %v978_v2 = vld [vmem:[%s969_s23 + $0x8] sm:$0xff] }
  0x17   : > { %v182_v3 = vsel %vm181_vm0, %v972_v0, 0.0  ;;  %v188_v4 = vsel %vm181_vm0, %v975_v1, 0.0  ;;  %v985_v5 = vld [vmem:[%s969_s23 + $0x18] sm:$0xff]  ;;  %v185_v6 = vsel %vm181_vm0, %v978_v2, 0.0  ;;  %v992_v8 = vld [vmem:[%s969_s23 + $0x20] sm:$0xff]  ;;  %v995_v9 = vld [vmem:[%s969_s23 + $0x28] sm:$0xff] }
  0x18   : > { %183 = vadd.xlane.f32.xlu0 %v182_v3  ;;  %189 = vadd.xlane.f32.xlu1 %v188_v4  ;;  %v191_v7 = vsel %vm181_vm0, %v985_v5, 0.0  ;;  %v194_v10 = vsel %vm181_vm0, %v992_v8, 0.0  ;;  %v197_v11 = vsel %vm181_vm0, %v995_v9, 0.0  ;;  %v1002_v12 = vld [vmem:[%s969_s23 + $0x30] sm:$0xff]  ;;  %v1005_v13 = vld [vmem:[%s969_s23 + $0x38] sm:$0xff]  ;;  %v1012_v16 = vld [vmem:[%s969_s23 + $0x40] sm:$0xff] }
  0x19   : > { %v200_v14 = vsel %vm181_vm0, %v1002_v12, 0.0  ;;  %v203_v15 = vsel %vm181_vm0, %v1005_v13, 0.0  ;;  %v1015_v17 = vld [vmem:[%s969_s23 + $0x48] sm:$0xff]  ;;  %v206_v18 = vsel %vm181_vm0, %v1012_v16, 0.0  ;;  %v1022_v20 = vld [vmem:[%s969_s23 + $0x50] sm:$0xff]  ;;  %v1025_v21 = vld [vmem:[%s969_s23 + $0x58] sm:$0xff] }
  0x1a   : > { %v209_v19 = vsel %vm181_vm0, %v1015_v17, 0.0  ;;  %v212_v22 = vsel %vm181_vm0, %v1022_v20, 0.0  ;;  %v215_v23 = vsel %vm181_vm0, %v1025_v21, 0.0  ;;  %v1032_v24 = vld [vmem:[%s969_s23 + $0x60] sm:$0xff]  ;;  %v1035_v25 = vld [vmem:[%s969_s23 + $0x68] sm:$0xff]  ;;  %v1042_v28 = vld [vmem:[%s969_s23 + $0x70] sm:$0xff] }
  0x1b   : > { %v218_v26 = vsel %vm181_vm0, %v1032_v24, 0.0  ;;  %v221_v27 = vsel %vm181_vm0, %v1035_v25, 0.0  ;;  %v224_v29 = vsel %vm181_vm0, %v1042_v28, 0.0 }
  0x1c   : > { %186 = vadd.xlane.f32.xlu0 %v185_v6  ;;  %192 = vadd.xlane.f32.xlu1 %v191_v7 }
  0x20   : > { %195 = vadd.xlane.f32.xlu0 %v194_v10  ;;  %198 = vadd.xlane.f32.xlu1 %v197_v11 }
  0x24   : > { %201 = vadd.xlane.f32.xlu0 %v200_v14  ;;  %204 = vadd.xlane.f32.xlu1 %v203_v15 }
  0x28   : > { %207 = vadd.xlane.f32.xlu0 %v206_v18  ;;  %210 = vadd.xlane.f32.xlu1 %v209_v19 }
  0x2c   : > { %213 = vadd.xlane.f32.xlu0 %v212_v22  ;;  %216 = vadd.xlane.f32.xlu1 %v215_v23 }
  0x30   : > { %219 = vadd.xlane.f32.xlu0 %v218_v26  ;;  %222 = vadd.xlane.f32.xlu1 %v221_v27 }
  0x34   : > { %225 = vadd.xlane.f32.xlu0 %v224_v29 }
  0xa5   : > { %v184_v30 = vpop.xlane.xlu0 %183  ;;  %v190_v31 = vpop.xlane.xlu1 %189 }
  0xa6   : > { %v227_v32 = vmul.f32 0.03125, %v184_v30  ;;  %v229_v33 = vmul.f32 0.03125, %v190_v31 }
  0xa8   : > { %v242_v34 = vsub.f32 %v972_v0, %v227_v32  ;;  %v244_v35 = vsub.f32 %v975_v1, %v229_v33 }
  0xa9   : > { %v187_v36 = vpop.xlane.xlu0 %186  ;;  %v193_v37 = vpop.xlane.xlu1 %192 }
  0xaa   : > { %v228_v38 = vmul.f32 0.03125, %v187_v36  ;;  %v230_v39 = vmul.f32 0.03125, %v193_v37  ;;  %v257_v40 = vmul.f32 %v242_v34, %v242_v34  ;;  %v259_v41 = vmul.f32 %v244_v35, %v244_v35 }
  0xac   : > { %v243_v42 = vsub.f32 %v978_v2, %v228_v38  ;;  %v245_v43 = vsub.f32 %v985_v5, %v230_v39  ;;  %v272_v44 = vsel %vm181_vm0, %v257_v40, 0.0  ;;  %v278_v47 = vsel %vm181_vm0, %v259_v41, 0.0 }
  0xad   : > { %273 = vadd.xlane.f32.xlu1 %v272_v44  ;;  %v196_v45 = vpop.xlane.xlu0 %195  ;;  %v199_v46 = vpop.xlane.xlu1 %198 }
  0xae   : > { %v231_v48 = vmul.f32 0.03125, %v196_v45  ;;  %v232_v49 = vmul.f32 0.03125, %v199_v46  ;;  %v258_v50 = vmul.f32 %v243_v42, %v243_v42  ;;  %v260_v51 = vmul.f32 %v245_v43, %v245_v43 }
  0xb0   : > { %v246_v52 = vsub.f32 %v992_v8, %v231_v48  ;;  %v247_v53 = vsub.f32 %v995_v9, %v232_v49  ;;  %v275_v54 = vsel %vm181_vm0, %v258_v50, 0.0  ;;  %v281_v57 = vsel %vm181_vm0, %v260_v51, 0.0 }
  0xb1   : > { %279 = vadd.xlane.f32.xlu1 %v278_v47  ;;  %276 = vadd.xlane.f32.xlu0 %v275_v54  ;;  %v202_v55 = vpop.xlane.xlu0 %201  ;;  %v205_v56 = vpop.xlane.xlu1 %204 }
  0xb2   : > { %v233_v58 = vmul.f32 0.03125, %v202_v55  ;;  %v234_v59 = vmul.f32 0.03125, %v205_v56  ;;  %v261_v60 = vmul.f32 %v246_v52, %v246_v52  ;;  %v262_v61 = vmul.f32 %v247_v53, %v247_v53 }
  0xb4   : > { %v248_v62 = vsub.f32 %v1002_v12, %v233_v58  ;;  %v249_v63 = vsub.f32 %v1005_v13, %v234_v59  ;;  %v284_v3 = vsel %vm181_vm0, %v261_v60, 0.0  ;;  %v287_v7 = vsel %vm181_vm0, %v262_v61, 0.0 }
  0xb5   : > { %282 = vadd.xlane.f32.xlu0 %v281_v57  ;;  %285 = vadd.xlane.f32.xlu1 %v284_v3  ;;  %v208_v4 = vpop.xlane.xlu0 %207  ;;  %v211_v6 = vpop.xlane.xlu1 %210 }
  0xb6   : > { %v235_v10 = vmul.f32 0.03125, %v208_v4  ;;  %v236_v11 = vmul.f32 0.03125, %v211_v6  ;;  %v263_v14 = vmul.f32 %v248_v62, %v248_v62  ;;  %v264_v15 = vmul.f32 %v249_v63, %v249_v63 }
  0xb8   : > { %v250_v18 = vsub.f32 %v1012_v16, %v235_v10  ;;  %v251_v19 = vsub.f32 %v1015_v17, %v236_v11  ;;  %v290_v22 = vsel %vm181_vm0, %v263_v14, 0.0  ;;  %v293_v27 = vsel %vm181_vm0, %v264_v15, 0.0 }
  0xb9   : > { %288 = vadd.xlane.f32.xlu0 %v287_v7  ;;  %291 = vadd.xlane.f32.xlu1 %v290_v22  ;;  %v214_v23 = vpop.xlane.xlu0 %213  ;;  %v217_v26 = vpop.xlane.xlu1 %216 }
  0xba   : > { %v237_v29 = vmul.f32 0.03125, %v214_v23  ;;  %v238_v30 = vmul.f32 0.03125, %v217_v26  ;;  %v265_v31 = vmul.f32 %v250_v18, %v250_v18  ;;  %v266_v32 = vmul.f32 %v251_v19, %v251_v19  ;;  %v1080_v26 = vld [vmem:[%s1238_s1] ss:$0 sm:$0xff] }
  0xbc   : > { %v252_v33 = vsub.f32 %v1022_v20, %v237_v29  ;;  %v253_v34 = vsub.f32 %v1025_v21, %v238_v30  ;;  %v296_v35 = vsel %vm181_vm0, %v265_v31, 0.0  ;;  %v299_v38 = vsel %vm181_vm0, %v266_v32, 0.0 }
  0xbd   : > { %294 = vadd.xlane.f32.xlu0 %v293_v27  ;;  %297 = vadd.xlane.f32.xlu1 %v296_v35  ;;  %v220_v36 = vpop.xlane.xlu0 %219  ;;  %v223_v37 = vpop.xlane.xlu1 %222 }
  0xbe   : > { %v239_v39 = vmul.f32 0.03125, %v220_v36  ;;  %v240_v40 = vmul.f32 0.03125, %v223_v37  ;;  %v267_v41 = vmul.f32 %v252_v33, %v252_v33  ;;  %v268_v42 = vmul.f32 %v253_v34, %v253_v34 }
  0xc0   : > { %v254_v43 = vsub.f32 %v1032_v24, %v239_v39  ;;  %v255_v44 = vsub.f32 %v1035_v25, %v240_v40  ;;  %v302_v45 = vsel %vm181_vm0, %v267_v41, 0.0  ;;  %v305_v48 = vsel %vm181_vm0, %v268_v42, 0.0 }
  0xc1   : > { %300 = vadd.xlane.f32.xlu0 %v299_v38  ;;  %303 = vadd.xlane.f32.xlu1 %v302_v45  ;;  %v226_v46 = vpop.xlane.xlu0 %225 }
  0xc2   : > { %v241_v47 = vmul.f32 0.03125, %v226_v46  ;;  %v269_v49 = vmul.f32 %v254_v43, %v254_v43  ;;  %v270_v50 = vmul.f32 %v255_v44, %v255_v44 }
  0xc4   : > { %v256_v51 = vsub.f32 %v1042_v28, %v241_v47  ;;  %v308_v52 = vsel %vm181_vm0, %v269_v49, 0.0  ;;  %v311_v53 = vsel %vm181_vm0, %v270_v50, 0.0 }
  0xc5   : > { %306 = vadd.xlane.f32.xlu0 %v305_v48  ;;  %309 = vadd.xlane.f32.xlu1 %v308_v52 }
  0xc6   : > { %v271_v54 = vmul.f32 %v256_v51, %v256_v51 }
  0xc8   : > { %v314_v55 = vsel %vm181_vm0, %v271_v54, 0.0 }
  0xc9   : > { %312 = vadd.xlane.f32.xlu0 %v311_v53  ;;  %315 = vadd.xlane.f32.xlu1 %v314_v55 }
 0x13a   : > { %v274_v56 = vpop.xlane.xlu1 %273 }
 0x13b   : > { %v317_v57 = vmul.f32 0.03125, %v274_v56 }
 0x13d   : > { %v332_v58 = vadd.f32 1e-05, %v317_v57 }
 0x13e   : > { %v280_v59 = vpop.xlane.xlu1 %279  ;;  %v277_v60 = vpop.xlane.xlu0 %276 }
 0x13f   : > { %795 = vrsqrt.f32 %v332_v58  ;;  %v319_v61 = vmul.f32 0.03125, %v280_v59  ;;  %v318_v62 = vmul.f32 0.03125, %v277_v60 }
 0x141   : > { %v334_v63 = vadd.f32 1e-05, %v319_v61  ;;  %v333_v3 = vadd.f32 1e-05, %v318_v62 }
 0x142   : > { %v286_v4 = vpop.xlane.xlu1 %285  ;;  %v283_v6 = vpop.xlane.xlu0 %282 }
 0x143   : > { %797 = vrsqrt.f32 %v334_v63  ;;  %v321_v7 = vmul.f32 0.03125, %v286_v4  ;;  %v320_v10 = vmul.f32 0.03125, %v283_v6 }
 0x144   : > { %799 = vrsqrt.f32 %v333_v3 }
 0x145   : > { %v336_v11 = vadd.f32 1e-05, %v321_v7  ;;  %v335_v14 = vadd.f32 1e-05, %v320_v10 }
 0x146   : > { %v292_v15 = vpop.xlane.xlu1 %291  ;;  %v289_v18 = vpop.xlane.xlu0 %288 }
 0x147   : > { %801 = vrsqrt.f32 %v336_v11  ;;  %v323_v19 = vmul.f32 0.03125, %v292_v15  ;;  %v322_v22 = vmul.f32 0.03125, %v289_v18 }
 0x148   : > { %803 = vrsqrt.f32 %v335_v14 }
 0x149   : > { %v796_v23 = vpop.eup %795  ;;  %v338_v27 = vadd.f32 1e-05, %v323_v19  ;;  %v337_v29 = vadd.f32 1e-05, %v322_v22 }
 0x14a   : > { %v362_v30 = vmul.f32 %v796_v23, %v972_v0  ;;  %v298_v31 = vpop.xlane.xlu1 %297  ;;  %v295_v32 = vpop.xlane.xlu0 %294 }
 0x14b   : > { %805 = vrsqrt.f32 %v338_v27  ;;  %v325_v33 = vmul.f32 0.03125, %v298_v31  ;;  %v324_v34 = vmul.f32 0.03125, %v295_v32 }
 0x14c   : > { %v383_v35 = vmul.f32 %v1080_v26, %v362_v30  ;;  %807 = vrsqrt.f32 %v337_v29 }
 0x14d   : > { %v798_v36 = vpop.eup %797  ;;  %v340_v37 = vadd.f32 1e-05, %v325_v33  ;;  %v339_v38 = vadd.f32 1e-05, %v324_v34 }
 0x14e   : > { %v800_v39 = vpop.eup %799  ;;  %398 = vst.msk [vmem:[%s1084_s28] sm:$0xff] %vm181_vm0, %v383_v35  ;;  %v364_v0 = vmul.f32 %v798_v36, %v975_v1  ;;  %v304_v40 = vpop.xlane.xlu1 %303 }
 0x14f   : > { %v301_v41 = vpop.xlane.xlu0 %300  ;;  %v363_v42 = vmul.f32 %v800_v39, %v978_v2  ;;  %809 = vrsqrt.f32 %v340_v37  ;;  %v327_v43 = vmul.f32 0.03125, %v304_v40 }
 0x150   : > { %v326_v44 = vmul.f32 0.03125, %v301_v41  ;;  %v385_v45 = vmul.f32 %v1080_v26, %v364_v0  ;;  %811 = vrsqrt.f32 %v339_v38 }
 0x151   : > { %v802_v46 = vpop.eup %801  ;;  %v384_v47 = vmul.f32 %v1080_v26, %v363_v42  ;;  %v342_v48 = vadd.f32 1e-05, %v327_v43 }
 0x152   : > { %v341_v49 = vadd.f32 1e-05, %v326_v44  ;;  %v804_v50 = vpop.eup %803  ;;  %400 = vst.msk [vmem:[%s1084_s28 + $0x10] sm:$0xff] %vm181_vm0, %v385_v45  ;;  %v366_v1 = vmul.f32 %v802_v46, %v992_v8  ;;  %v310_v51 = vpop.xlane.xlu1 %309 }
 0x153   : > { %v307_v52 = vpop.xlane.xlu0 %306  ;;  %399 = vst.msk [vmem:[%s1084_s28 + $0x8] sm:$0xff] %vm181_vm0, %v384_v47  ;;  %v365_v2 = vmul.f32 %v804_v50, %v985_v5  ;;  %813 = vrsqrt.f32 %v342_v48  ;;  %v329_v53 = vmul.f32 0.03125, %v310_v51 }
 0x154   : > { %v328_v54 = vmul.f32 0.03125, %v307_v52  ;;  %v387_v55 = vmul.f32 %v1080_v26, %v366_v1  ;;  %815 = vrsqrt.f32 %v341_v49 }
 0x155   : > { %v806_v56 = vpop.eup %805  ;;  %v386_v57 = vmul.f32 %v1080_v26, %v365_v2  ;;  %v344_v58 = vadd.f32 1e-05, %v329_v53 }
 0x156   : > { %v343_v59 = vadd.f32 1e-05, %v328_v54  ;;  %v808_v60 = vpop.eup %807  ;;  %402 = vst.msk [vmem:[%s1084_s28 + $0x20] sm:$0xff] %vm181_vm0, %v387_v55  ;;  %v368_v8 = vmul.f32 %v806_v56, %v1002_v12  ;;  %v316_v61 = vpop.xlane.xlu1 %315 }
 0x157   : > { %v313_v5 = vpop.xlane.xlu0 %312  ;;  %401 = vst.msk [vmem:[%s1084_s28 + $0x18] sm:$0xff] %vm181_vm0, %v386_v57  ;;  %v367_v62 = vmul.f32 %v808_v60, %v995_v9  ;;  %817 = vrsqrt.f32 %v344_v58  ;;  %v331_v63 = vmul.f32 0.03125, %v316_v61 }
 0x158   : > { %v330_v3 = vmul.f32 0.03125, %v313_v5  ;;  %v389_v4 = vmul.f32 %v1080_v26, %v368_v8  ;;  %819 = vrsqrt.f32 %v343_v59 }
 0x159   : > { %v810_v6 = vpop.eup %809  ;;  %v388_v7 = vmul.f32 %v1080_v26, %v367_v62  ;;  %v346_v10 = vadd.f32 1e-05, %v331_v63 }
 0x15a   : > { %v345_v12 = vadd.f32 1e-05, %v330_v3  ;;  %v812_v11 = vpop.eup %811  ;;  %404 = vst.msk [vmem:[%s1084_s28 + $0x30] sm:$0xff] %vm181_vm0, %v389_v4  ;;  %v370_v14 = vmul.f32 %v810_v6, %v1012_v16 }
 0x15b   : > { %403 = vst.msk [vmem:[%s1084_s28 + $0x28] sm:$0xff] %vm181_vm0, %v388_v7  ;;  %v369_v9 = vmul.f32 %v812_v11, %v1005_v13  ;;  %821 = vrsqrt.f32 %v346_v10 }
 0x15c   : > { %v391_v15 = vmul.f32 %v1080_v26, %v370_v14  ;;  %823 = vrsqrt.f32 %v345_v12 }
 0x15d   : > { %v814_v18 = vpop.eup %813  ;;  %v390_v19 = vmul.f32 %v1080_v26, %v369_v9 }
 0x15e   : > { %v816_v22 = vpop.eup %815  ;;  %406 = vst.msk [vmem:[%s1084_s28 + $0x40] sm:$0xff] %vm181_vm0, %v391_v15  ;;  %v372_v23 = vmul.f32 %v814_v18, %v1022_v20 }
 0x15f   : > { %405 = vst.msk [vmem:[%s1084_s28 + $0x38] sm:$0xff] %vm181_vm0, %v390_v19  ;;  %v371_v16 = vmul.f32 %v816_v22, %v1015_v17 }
 0x160   : > { %v393_v13 = vmul.f32 %v1080_v26, %v372_v23 }
 0x161   : > { %v818_v27 = vpop.eup %817  ;;  %v392_v29 = vmul.f32 %v1080_v26, %v371_v16 }
 0x162   : > { %v820_v30 = vpop.eup %819  ;;  %408 = vst.msk [vmem:[%s1084_s28 + $0x50] sm:$0xff] %vm181_vm0, %v393_v13  ;;  %v374_v31 = vmul.f32 %v818_v27, %v1032_v24 }
 0x163   : > { %407 = vst.msk [vmem:[%s1084_s28 + $0x48] sm:$0xff] %vm181_vm0, %v392_v29  ;;  %v373_v20 = vmul.f32 %v820_v30, %v1025_v21 }
 0x164   : > { %v395_v32 = vmul.f32 %v1080_v26, %v374_v31 }
 0x165   : > { %v822_v33 = vpop.eup %821  ;;  %v394_v17 = vmul.f32 %v1080_v26, %v373_v20  ;;  %419 = sbr.rel (!%p957_p4) target bundleno = 425 (0x1a9), region = 32 }
 0x166   : > { %v824_v34 = vpop.eup %823  ;;  %410 = vst.msk [vmem:[%s1084_s28 + $0x60] sm:$0xff] %vm181_vm0, %v395_v32  ;;  %v376_v35 = vmul.f32 %v822_v33, %v1042_v28 }
 0x167   : > { %409 = vst.msk [vmem:[%s1084_s28 + $0x58] sm:$0xff] %vm181_vm0, %v394_v17  ;;  %v375_v36 = vmul.f32 %v824_v34, %v1035_v25 }
 0x168   : > { %v397_v24 = vmul.f32 %v1080_v26, %v376_v35 }
 0x169   : > { %v396_v37 = vmul.f32 %v1080_v26, %v375_v36 }
 0x16a   : > { %412 = vst.msk [vmem:[%s1084_s28 + $0x70] sm:$0xff] %vm181_vm0, %v397_v24 }
 0x16b   : > { %411 = vst.msk [vmem:[%s1084_s28 + $0x68] sm:$0xff] %vm181_vm0, %v396_v37 }
 0x16c   : > { %s1248_s29 = smov (!%p422_p8, %s421_s29), 15 }
 0x16d   : > { %s692_s6 = sshll.u32 %s1248_s29, 7 }
 0x16e   : > { %p695_p9 = scmp.eq.s32.totalorder %s692_s6, 0 }
 0x16f   : > { %825 = sdivrem.u32 (!%p695_p9), %s1248_s29, 15 }
 0x170   : > { %430 = sbr.rel (%p695_p9) target bundleno = 425 (0x1a9), region = 36 }
 0x178   : > { %s1157_s7 = spop.drf %825 }
 0x179   : > { %p696_p10 = scmp.le.s32.totalorder %s1157_s7, 0 }
 0x17a   : > { %s1241_s8 = smov (!%p696_p10), %s1151_s5  ;;  %s1242_s9 = smov (!%p696_p10), %s1084_s28 }
 0x17b   : > { %642 = sbr.rel (%p696_p10) target bundleno = 396 (0x18c), region = 112  ;;  %s1166_s11 = smov (!%p696_p10), 0  }
 0x17c   : > { %s1168_s12 = smov (!%p696_p10), 0  }
 0x182 LB: >> { %v522_v21 = vld [vmem:[%s891_s9] sm:$0xff]  ;;  %v524_v25 = vld [vmem:[%s891_s9 + $0x8] sm:$0xff]  ;;  %v526_v28 = vld [vmem:[%s891_s9 + $0x10] sm:$0xff]  ;;  %s552_s14 = sadd.s32 1, %s895_s11  ;;  %s516_s12 = sadd.s32 1, %s899_s12   ;;  %s899_s12 = sphi %s1168_s12, %s516_s12   ;;  %s895_s11 = sphi %s1166_s11, %s1243_s11   ;;  %s891_s9 = sphi %s1242_s9, %s557_s9   ;;  %s887_s8 = sphi %s1241_s8, %s558_s8  }
 0x183   : >> { %523 = vst [vmem:[%s887_s8] sm:$0xff] %v522_v21  ;;  %525 = vst [vmem:[%s887_s8 + $0x8] sm:$0xff] %v524_v25  ;;  %v528_v26 = vld [vmem:[%s891_s9 + $0x18] sm:$0xff]  ;;  %v530_v38 = vld [vmem:[%s891_s9 + $0x20] sm:$0xff]  ;;  %p553_p11 = scmp.ge.s32.totalorder %s552_s14, %s1157_s7  ;;  %p515_p12 = scmp.ge.s32.totalorder %s516_s12, %s1157_s7 }
 0x184   : >> { %527 = vst [vmem:[%s887_s8 + $0x10] sm:$0xff] %v526_v28  ;;  %v532_v39 = vld [vmem:[%s891_s9 + $0x28] sm:$0xff]  ;;  %529 = vst [vmem:[%s887_s8 + $0x18] sm:$0xff] %v528_v26  ;;  %v534_v0 = vld [vmem:[%s891_s9 + $0x30] sm:$0xff] }
 0x185   : >> { %531 = vst [vmem:[%s887_s8 + $0x20] sm:$0xff] %v530_v38  ;;  %533 = vst [vmem:[%s887_s8 + $0x28] sm:$0xff] %v532_v39  ;;  %v536_v40 = vld [vmem:[%s891_s9 + $0x38] sm:$0xff]  ;;  %v538_v41 = vld [vmem:[%s891_s9 + $0x40] sm:$0xff]  ;;  %s1250_s14 = smov (%p553_p11, %s552_s14), 0  ;;  %518 = sbr.rel (!%p515_p12) target bundleno = 386 (0x182), region = 118 }
 0x186   : >> { %535 = vst [vmem:[%s887_s8 + $0x30] sm:$0xff] %v534_v0  ;;  %537 = vst [vmem:[%s887_s8 + $0x38] sm:$0xff] %v536_v40  ;;  %v540_v42 = vld [vmem:[%s891_s9 + $0x48] sm:$0xff]  ;;  %v542_v43 = vld [vmem:[%s891_s9 + $0x50] sm:$0xff]  ;;  %s555_s15 = smul.u32 120, %s1250_s14  ;;  %s1243_s11 = smov %s1250_s14 }
 0x187   : >> { %539 = vst [vmem:[%s887_s8 + $0x40] sm:$0xff] %v538_v41  ;;  %v544_v44 = vld [vmem:[%s891_s9 + $0x58] sm:$0xff]  ;;  %541 = vst [vmem:[%s887_s8 + $0x48] sm:$0xff] %v540_v42  ;;  %v546_v45 = vld [vmem:[%s891_s9 + $0x60] sm:$0xff] }
 0x188   : >> { %543 = vst [vmem:[%s887_s8 + $0x50] sm:$0xff] %v542_v43  ;;  %545 = vst [vmem:[%s887_s8 + $0x58] sm:$0xff] %v544_v44  ;;  %v548_v46 = vld [vmem:[%s891_s9 + $0x68] sm:$0xff]  ;;  %v550_v47 = vld [vmem:[%s891_s9 + $0x70] sm:$0xff]  ;;  %s557_s9 = scalar_lea.vmem %s1084_s28, %s555_s15 [#allocation2]  }
 0x189   : >> { %547 = vst [vmem:[%s887_s8 + $0x60] sm:$0xff] %v546_v45  ;;  %549 = vst [vmem:[%s887_s8 + $0x68] sm:$0xff] %v548_v46 }
 0x18a   : >> { %551 = vst [vmem:[%s887_s8 + $0x70] sm:$0xff] %v550_v47  ;;  %s558_s8 = scalar_lea.vmem %s1151_s5, %s555_s15  }
 0x18c PF: > { %827 = sdivrem.u32 %s1248_s29, 15 }
 0x18d   : > { %s697_s17 = smul.u32 120, %s1157_s7 }
 0x18f   : > { %s563_s18 = scalar_lea.vmem %s1084_s28, %s697_s17 [#allocation2]   ;;  %s565_s19 = scalar_lea.vmem %s1151_s5, %s697_s17  }
 0x195   : > { %s828_s20 = spop.drf %827 }
 0x196   : > { %p699_p13 = scmp.le.s32.totalorder %s828_s20, 0 }
 0x197   : > { %s901_s21 = smov (!%p699_p13), %s565_s19   ;;  %s905_s22 = smov (!%p699_p13), %s563_s18  }
 0x198   : > { %656 = sbr.rel (%p699_p13) target bundleno = 425 (0x1a9), region = 123  ;;  %s909_s23 = smov (!%p699_p13), 0  }
 0x199   : > { %s913_s24 = smov (!%p699_p13), 0  }
 0x19f LB: >> { %v575_v48 = vld [vmem:[%s907_s22] sm:$0xff]  ;;  %s577_s25 = sadd.s32 1, %s911_s23  ;;  %s569_s24 = sadd.s32 1, %s915_s24   ;;  %s915_s24 = sphi %s913_s24, %s569_s24   ;;  %s911_s23 = sphi %s909_s23, %s910_s23   ;;  %s907_s22 = sphi %s905_s22, %s582_s22   ;;  %s903_s21 = sphi %s901_s21, %s583_s21  }
 0x1a0   : >> { %576 = vst [vmem:[%s903_s21] sm:$0xff] %v575_v48  ;;  %p578_p0 = scmp.ge.s32.totalorder %s577_s25, %s828_s20  ;;  %p568_p1 = scmp.ge.s32.totalorder %s569_s24, %s828_s20 }
 0x1a2   : >> { %s1252_s25 = smov (%p578_p0, %s577_s25), 0  ;;  %571 = sbr.rel (!%p568_p1) target bundleno = 415 (0x19f), region = 129 }
 0x1a3   : >> { %s700_s26 = sshll.u32 %s1252_s25, 3  ;;  %s910_s23 = smov %s1252_s25  }
 0x1a4   : >> { %s582_s22 = scalar_lea.vmem %s563_s18, %s700_s26 [#allocation2]   ;;  %s583_s21 = scalar_lea.vmem %s565_s19, %s700_s26  }
 0x1a9 PF: > { %p9_p2 = scmp.ge.s32.totalorder %s947_s13, 7   ;;  %s1244_s9 = smov %s879_s10 }
 0x1aa   : > { %s1245_s10 = smov %s955_s16  ;;  %s1246_s11 = smov %s947_s13 }
 0x1ab   :  { %11 = sbr.rel (!%p9_p2) target bundleno = 2 (0x2), region = 140 }

</bundles_post_ra>
